<compile_context>
chip_gen: v7x
topology: tpu7x:2x2x1
jax: 0.10.0
libtpu: 0.0.40
codegen_flags: <defaults>
</compile_context>

<pallas_src>
import functools

import jax
import jax.numpy as jnp
from jax import lax
from jax.experimental import pallas as pl
from jax.experimental.pallas import tpu as pltpu


def _round_up(x, m):
    return (x + m - 1) // m * m


def encoder_kernel(x_ref, w0_ref, w1_ref, w2_ref, bconv_ref,
                   wlin_ref, blin_ref, out_ref, *, seq_len):
    """One grid step processes TB batch elements.

    x_ref    : (TB*L, C)  f32   TB batch elements stacked along sublanes
    w0/1/2   : (C, Hp)    bf16  conv taps for x[l-1] / x[l] / x[l+1]
    bconv_ref: (1, Hp)    f32
    wlin_ref : (Hp, Dp)   bf16  already scaled by 1/L (mean folded in)
    blin_ref : (1, Dp)    f32
    out_ref  : (TB, Dp)   f32
    """
    L = seq_len
    x = x_ref[...]                                    # (TB*L, C) f32
    tbl = x.shape[0]
    tb = tbl // L

    # Row position within each batch element; used to mask the +/-1 shifts at
    # element boundaries so rows never leak across batch elements.
    pos = lax.broadcasted_iota(jnp.int32, x.shape, 0) % L

    # x[l-1]: cyclic roll down by 1 (XLU slot), zero the first row of each
    # batch element.
    x_prev = pltpu.roll(x, shift=1, axis=0)
    x_prev = jnp.where(pos == 0, jnp.zeros_like(x_prev), x_prev)
    # x[l+1]: cyclic roll "up by 1" == roll down by (N-1) (pltpu.roll requires
    # a non-negative shift), zero the last row of each batch element.
    x_next = pltpu.roll(x, shift=tbl - 1, axis=0)
    x_next = jnp.where(pos == L - 1, jnp.zeros_like(x_next), x_next)

    xb = x.astype(jnp.bfloat16)
    xpb = x_prev.astype(jnp.bfloat16)
    xnb = x_next.astype(jnp.bfloat16)

    # Conv1d(k=3, padding=1) as three tap-wise bf16 matmuls, f32 accumulation.
    h = jnp.dot(xpb, w0_ref[...], preferred_element_type=jnp.float32)
    h = h + jnp.dot(xb, w1_ref[...], preferred_element_type=jnp.float32)
    h = h + jnp.dot(xnb, w2_ref[...], preferred_element_type=jnp.float32)
    h = jnp.maximum(h + bconv_ref[...], 0.0)          # (TB*L, Hp) f32

    # Mean over the sequence (the 1/L lives in wlin already) -> (TB, Hp).
    pooled = jnp.sum(h.reshape(tb, L, h.shape[-1]), axis=1)

    # Final projection: one (TB, Hp) @ (Hp, Dp) matmul for the whole block.
    z = jnp.dot(pooled.astype(jnp.bfloat16), wlin_ref[...],
                preferred_element_type=jnp.float32)
    out_ref[...] = (z + blin_ref[...]).astype(out_ref.dtype)


def contrastive_forward(x, w_conv, b_conv, w_lin, b_lin, *, tb=8):
    """x: (B, L, C) float32 -> embeddings (B, D) float32."""
    B, L, C = x.shape
    H = w_conv.shape[0]
    D = w_lin.shape[1]

    Hp = _round_up(H, 128)
    Dp = _round_up(D, 128)
    Bp = _round_up(B, tb)

    def pad_to(a, shape):
        return jnp.pad(a, [(0, s - d) for d, s in zip(a.shape, shape)])

    # Conv taps: tap k multiplies x[l + k - 1].  Host-cast weights to bf16,
    # pad H/D to lane-full 128.
    w0 = pad_to(w_conv[:, :, 0].T, (C, Hp)).astype(jnp.bfloat16)
    w1 = pad_to(w_conv[:, :, 1].T, (C, Hp)).astype(jnp.bfloat16)
    w2 = pad_to(w_conv[:, :, 2].T, (C, Hp)).astype(jnp.bfloat16)
    bconv = pad_to(b_conv.reshape(1, H), (1, Hp)).astype(jnp.float32)
    # Fold the 1/L of the mean pool into the projection weight.
    wlin = pad_to(w_lin / L, (Hp, Dp)).astype(jnp.bfloat16)
    blin = pad_to(b_lin.reshape(1, D), (1, Dp)).astype(jnp.float32)

    # Batch padded to a multiple of TB; TB elements stacked per grid step.
    xp = pad_to(x, (Bp, L, C)).reshape(Bp * L, C).astype(jnp.float32)

    out = pl.pallas_call(
        functools.partial(encoder_kernel, seq_len=L),
        out_shape=jax.ShapeDtypeStruct((Bp, Dp), jnp.float32),
        grid=(Bp // tb,),
        in_specs=[
            pl.BlockSpec((tb * L, C), lambda i: (i, 0)),
            pl.BlockSpec((C, Hp), lambda i: (0, 0)),
            pl.BlockSpec((C, Hp), lambda i: (0, 0)),
            pl.BlockSpec((C, Hp), lambda i: (0, 0)),
            pl.BlockSpec((1, Hp), lambda i: (0, 0)),
            pl.BlockSpec((Hp, Dp), lambda i: (0, 0)),
            pl.BlockSpec((1, Dp), lambda i: (0, 0)),
        ],
        out_specs=pl.BlockSpec((tb, Dp), lambda i: (i, 0)),
        compiler_params=pltpu.CompilerParams(
            dimension_semantics=("parallel",),
            vmem_limit_bytes=64 * 1024 * 1024,
        ),
    )(xp, w0, w1, w2, bconv, wlin, blin)

    return out[:B, :D]


def reference_forward(x, w_conv, b_conv, w_lin, b_lin):
    """Pure-JAX f32 reference following the PyTorch semantics exactly."""
    xp = jnp.transpose(x, (0, 2, 1))  # permute(0, 2, 1): (B, L, C) -> (B, C, L)
    h = lax.conv_general_dilated(
        xp, w_conv,
        window_strides=(1,), padding=[(1, 1)],
        dimension_numbers=("NCW", "OIW", "NCW"),
    ) + b_conv[None, :, None]                 # (B, H, L)
    h = jnp.maximum(h, 0.0)
    pooled = jnp.mean(h, axis=2)              # (B, H)
    return pooled @ w_lin + b_lin[None, :]    # (B, D)


if __name__ == "__main__":
    B, L, C = 2, 16, 8
    H, D = 32, 16

    key = jax.random.PRNGKey(0)
    kx, kwc, kbc, kwl, kbl = jax.random.split(key, 5)

    x = jax.random.normal(kx, (B, L, C), dtype=jnp.float32)
    w_conv = jax.random.normal(kwc, (H, C, 3), dtype=jnp.float32) * 0.1
    b_conv = jax.random.normal(kbc, (H,), dtype=jnp.float32) * 0.1
    w_lin = jax.random.normal(kwl, (H, D), dtype=jnp.float32) * 0.1
    b_lin = jax.random.normal(kbl, (D,), dtype=jnp.float32) * 0.1

    out = contrastive_forward(x, w_conv, b_conv, w_lin, b_lin)
    out = jax.block_until_ready(out)

    ref = reference_forward(x, w_conv, b_conv, w_lin, b_lin)
    assert out.shape == (B, D)
    # bf16 MXU operands (f32 accumulation) -> tolerance loosened vs pure-f32.
    assert jnp.allclose(out, ref, atol=1e-2, rtol=1e-2), "mismatch vs reference"

    print("KERNEL_OK")
</pallas_src>

<mosaic_0001>
module attributes {stable_mosaic.version = 11 : i64} {
  func.func @encoder_kernel(%arg0: i32, %arg1: memref<128x8xf32, #tpu.memory_space<vmem>>, %arg2: memref<8x128xbf16, #tpu.memory_space<vmem>>, %arg3: memref<8x128xbf16, #tpu.memory_space<vmem>>, %arg4: memref<8x128xbf16, #tpu.memory_space<vmem>>, %arg5: memref<1x128xf32, #tpu.memory_space<vmem>>, %arg6: memref<128x128xbf16, #tpu.memory_space<vmem>>, %arg7: memref<1x128xf32, #tpu.memory_space<vmem>>, %arg8: memref<8x128xf32, #tpu.memory_space<vmem>>) attributes {dimension_semantics = [#tpu.dimension_semantics<parallel>], iteration_bounds = array<i64: 1>, scalar_prefetch = 0 : i64, scratch_operands = 0 : i64, tpu.core_type = #tpu.core_type<tc>, window_params = [{transform_indices = @transform_0, window_bounds = array<i64: 128, 8>}, {pipeline_mode = #tpu.pipeline_mode<synchronous>, transform_indices = @transform_1, window_bounds = array<i64: 8, 128>}, {pipeline_mode = #tpu.pipeline_mode<synchronous>, transform_indices = @transform_2, window_bounds = array<i64: 8, 128>}, {pipeline_mode = #tpu.pipeline_mode<synchronous>, transform_indices = @transform_3, window_bounds = array<i64: 8, 128>}, {pipeline_mode = #tpu.pipeline_mode<synchronous>, transform_indices = @transform_4, window_bounds = array<i64: 1, 128>}, {pipeline_mode = #tpu.pipeline_mode<synchronous>, transform_indices = @transform_5, window_bounds = array<i64: 128, 128>}, {pipeline_mode = #tpu.pipeline_mode<synchronous>, transform_indices = @transform_6, window_bounds = array<i64: 1, 128>}, {transform_indices = @transform_7, window_bounds = array<i64: 8, 128>}]} {
    %c0 = arith.constant 0 : index
    %c0_0 = arith.constant 0 : index
    %0 = vector.load %arg1[%c0, %c0_0] : memref<128x8xf32, #tpu.memory_space<vmem>>, vector<128x8xf32>
    %1 = tpu.iota {dimensions = array<i32: 0>} : vector<128x8xi32>
    %c16_i32 = arith.constant 16 : i32
    %c0_i32 = arith.constant 0 : i32
    %2 = arith.cmpi eq, %c16_i32, %c0_i32 : i32
    %c1_i32 = arith.constant 1 : i32
    %3 = arith.select %2, %c1_i32, %c16_i32 : i32
    %4 = vector.broadcast %3 : i32 to vector<128x8xi32>
    %5 = arith.remsi %1, %4 : vector<128x8xi32>
    %c0_i32_1 = arith.constant 0 : i32
    %6 = vector.broadcast %c0_i32_1 : i32 to vector<128x8xi32>
    %7 = arith.cmpi ne, %5, %6 : vector<128x8xi32>
    %c0_i32_2 = arith.constant 0 : i32
    %8 = vector.broadcast %c0_i32_2 : i32 to vector<128x8xi32>
    %9 = arith.cmpi slt, %5, %8 : vector<128x8xi32>
    %c0_i32_3 = arith.constant 0 : i32
    %10 = arith.cmpi slt, %3, %c0_i32_3 : i32
    %11 = vector.broadcast %10 : i1 to vector<128x8xi1>
    %12 = vector.broadcast %11 : vector<128x8xi1> to vector<128x8xi1>
    %13 = arith.xori %9, %12 : vector<128x8xi1>
    %14 = arith.andi %13, %7 : vector<128x8xi1>
    %15 = vector.broadcast %3 : i32 to vector<128x8xi32>
    %16 = arith.addi %5, %15 : vector<128x8xi32>
    %17 = arith.select %14, %16, %5 : vector<128x8xi1>, vector<128x8xi32>
    %c1_i32_4 = arith.constant 1 : i32
    %18 = tpu.dynamic_rotate %0 by %c1_i32_4 dim 0 : vector<128x8xf32>, i32 -> vector<128x8xf32>
    %c0_i32_5 = arith.constant 0 : i32
    %19 = vector.broadcast %c0_i32_5 : i32 to vector<128x8xi32>
    %20 = arith.cmpi eq, %17, %19 : vector<128x8xi32>
    %cst = arith.constant 0.000000e+00 : f32
    %21 = vector.broadcast %cst : f32 to vector<128x8xf32>
    %22 = arith.select %20, %21, %18 : vector<128x8xi1>, vector<128x8xf32>
    %c127_i32 = arith.constant 127 : i32
    %23 = tpu.dynamic_rotate %0 by %c127_i32 dim 0 : vector<128x8xf32>, i32 -> vector<128x8xf32>
    %c15_i32 = arith.constant 15 : i32
    %24 = vector.broadcast %c15_i32 : i32 to vector<128x8xi32>
    %25 = arith.cmpi eq, %17, %24 : vector<128x8xi32>
    %cst_6 = arith.constant 0.000000e+00 : f32
    %26 = vector.broadcast %cst_6 : f32 to vector<128x8xf32>
    %27 = arith.select %25, %26, %23 : vector<128x8xi1>, vector<128x8xf32>
    %28 = arith.truncf %0 : vector<128x8xf32> to vector<128x8xbf16>
    %29 = arith.truncf %22 : vector<128x8xf32> to vector<128x8xbf16>
    %30 = arith.truncf %27 : vector<128x8xf32> to vector<128x8xbf16>
    %c0_7 = arith.constant 0 : index
    %c0_8 = arith.constant 0 : index
    %31 = vector.load %arg2[%c0_7, %c0_8] : memref<8x128xbf16, #tpu.memory_space<vmem>>, vector<8x128xbf16>
    %cst_9 = arith.constant dense<0.000000e+00> : vector<128x128xf32>
    %32 = tpu.matmul %29, %31, %cst_9 {dimension_numbers = #tpu.dot_dimension_numbers<[1], [0], [0], [1], [0, 0, 1, 1], [], []>} : vector<128x8xbf16>, vector<8x128xbf16>, vector<128x128xf32> -> vector<128x128xf32>
    %c0_10 = arith.constant 0 : index
    %c0_11 = arith.constant 0 : index
    %33 = vector.load %arg3[%c0_10, %c0_11] : memref<8x128xbf16, #tpu.memory_space<vmem>>, vector<8x128xbf16>
    %cst_12 = arith.constant dense<0.000000e+00> : vector<128x128xf32>
    %34 = tpu.matmul %28, %33, %cst_12 {dimension_numbers = #tpu.dot_dimension_numbers<[1], [0], [0], [1], [0, 0, 1, 1], [], []>} : vector<128x8xbf16>, vector<8x128xbf16>, vector<128x128xf32> -> vector<128x128xf32>
    %35 = arith.addf %32, %34 : vector<128x128xf32>
    %c0_13 = arith.constant 0 : index
    %c0_14 = arith.constant 0 : index
    %36 = vector.load %arg4[%c0_13, %c0_14] : memref<8x128xbf16, #tpu.memory_space<vmem>>, vector<8x128xbf16>
    %cst_15 = arith.constant dense<0.000000e+00> : vector<128x128xf32>
    %37 = tpu.matmul %30, %36, %cst_15 {dimension_numbers = #tpu.dot_dimension_numbers<[1], [0], [0], [1], [0, 0, 1, 1], [], []>} : vector<128x8xbf16>, vector<8x128xbf16>, vector<128x128xf32> -> vector<128x128xf32>
    %38 = arith.addf %35, %37 : vector<128x128xf32>
    %c0_16 = arith.constant 0 : index
    %c0_17 = arith.constant 0 : index
    %39 = vector.load %arg5[%c0_16, %c0_17] : memref<1x128xf32, #tpu.memory_space<vmem>>, vector<1x128xf32>
    %40 = vector.broadcast %39 : vector<1x128xf32> to vector<128x128xf32>
    %41 = arith.addf %38, %40 : vector<128x128xf32>
    %cst_18 = arith.constant 0.000000e+00 : f32
    %42 = vector.broadcast %cst_18 : f32 to vector<128x128xf32>
    %43 = arith.maximumf %41, %42 : vector<128x128xf32>
    %44 = vector.shape_cast %43 : vector<128x128xf32> to vector<8x16x128xf32>
    %cst_19 = arith.constant dense<0.000000e+00> : vector<8x128xf32>
    %45 = vector.multi_reduction <add>, %44, %cst_19 [1] : vector<8x16x128xf32> to vector<8x128xf32>
    %46 = arith.truncf %45 : vector<8x128xf32> to vector<8x128xbf16>
    %c0_20 = arith.constant 0 : index
    %c0_21 = arith.constant 0 : index
    %47 = vector.load %arg6[%c0_20, %c0_21] : memref<128x128xbf16, #tpu.memory_space<vmem>>, vector<128x128xbf16>
    %cst_22 = arith.constant dense<0.000000e+00> : vector<8x128xf32>
    %48 = tpu.matmul %46, %47, %cst_22 {dimension_numbers = #tpu.dot_dimension_numbers<[1], [0], [0], [1], [0, 0, 1, 1], [], []>} : vector<8x128xbf16>, vector<128x128xbf16>, vector<8x128xf32> -> vector<8x128xf32>
    %c0_23 = arith.constant 0 : index
    %c0_24 = arith.constant 0 : index
    %49 = vector.load %arg7[%c0_23, %c0_24] : memref<1x128xf32, #tpu.memory_space<vmem>>, vector<1x128xf32>
    %50 = vector.broadcast %49 : vector<1x128xf32> to vector<8x128xf32>
    %51 = arith.addf %48, %50 : vector<8x128xf32>
    %c0_25 = arith.constant 0 : index
    %c0_26 = arith.constant 0 : index
    %52 = vector.load %arg8[%c0_25, %c0_26] : memref<8x128xf32, #tpu.memory_space<vmem>>, vector<8x128xf32>
    tpu.vector_store %arg8[%c0_25, %c0_26], %51 {strides = array<i32>} : memref<8x128xf32, #tpu.memory_space<vmem>>, vector<8x128xf32>,
    return
  }
  func.func @transform_0(%arg0: i32) -> (i32, i32) {
    %c0_i32 = arith.constant 0 : i32
    %c0_i32_0 = arith.constant 0 : i32
    return %arg0, %c0_i32 : i32, i32
  }
  func.func @transform_1(%arg0: i32) -> (i32, i32) {
    %c0_i32 = arith.constant 0 : i32
    %c0_i32_0 = arith.constant 0 : i32
    %c0_i32_1 = arith.constant 0 : i32
    return %c0_i32, %c0_i32_0 : i32, i32
  }
  func.func @transform_2(%arg0: i32) -> (i32, i32) {
    %c0_i32 = arith.constant 0 : i32
    %c0_i32_0 = arith.constant 0 : i32
    %c0_i32_1 = arith.constant 0 : i32
    return %c0_i32, %c0_i32_0 : i32, i32
  }
  func.func @transform_3(%arg0: i32) -> (i32, i32) {
    %c0_i32 = arith.constant 0 : i32
    %c0_i32_0 = arith.constant 0 : i32
    %c0_i32_1 = arith.constant 0 : i32
    return %c0_i32, %c0_i32_0 : i32, i32
  }
  func.func @transform_4(%arg0: i32) -> (i32, i32) {
    %c0_i32 = arith.constant 0 : i32
    %c0_i32_0 = arith.constant 0 : i32
    %c0_i32_1 = arith.constant 0 : i32
    return %c0_i32, %c0_i32_0 : i32, i32
  }
  func.func @transform_5(%arg0: i32) -> (i32, i32) {
    %c0_i32 = arith.constant 0 : i32
    %c0_i32_0 = arith.constant 0 : i32
    %c0_i32_1 = arith.constant 0 : i32
    return %c0_i32, %c0_i32_0 : i32, i32
  }
  func.func @transform_6(%arg0: i32) -> (i32, i32) {
    %c0_i32 = arith.constant 0 : i32
    %c0_i32_0 = arith.constant 0 : i32
    %c0_i32_1 = arith.constant 0 : i32
    return %c0_i32, %c0_i32_0 : i32, i32
  }
  func.func @transform_7(%arg0: i32) -> (i32, i32) {
    %c0_i32 = arith.constant 0 : i32
    %c0_i32_0 = arith.constant 0 : i32
    return %arg0, %c0_i32 : i32, i32
  }
}

</mosaic_0001>

<bundles_post_ra>
// kernel: tpu_custom_call.1
= control target key start
LH: loop header
LB: loop body
LE: loop exit
PB: predicated region body
PF: predicated region fallthrough
CT: control target
= control target key end

     0   :  { %12 = vsyncpa [#allocation3], 0  ;;  %s2001_s0 = inlined_call_operand.hbm [shape: f32[128,8], index: 0, kind: input, shape index: {}]   ;;  %s2002_s1 = inlined_call_operand.hbm [shape: bf16[8,128], index: 1, kind: input, shape index: {}]   ;;  %s2003_s2 = inlined_call_operand.hbm [shape: bf16[8,128], index: 2, kind: input, shape index: {}]   ;;  %s2004_s3 = inlined_call_operand.hbm [shape: bf16[8,128], index: 3, kind: input, shape index: {}]   ;;  %s2005_s4 = inlined_call_operand.hbm [shape: f32[1,128], index: 4, kind: input, shape index: {}]   ;;  %s2006_s5 = inlined_call_operand.hbm [shape: bf16[128,128], index: 5, kind: input, shape index: {}]   ;;  %s2007_s6 = inlined_call_operand.hbm [shape: f32[1,128], index: 6, kind: input, shape index: {}]   ;;  %s2008_s7 = inlined_call_operand.hbm [shape: f32[8,128], index: 7, kind: output, shape index: {}]  }
   0x1   :  { %13 = vsyncpa [#allocation6], 0 }
   0x2   :  { %14 = vsyncpa [#allocation9], 0 }
   0x3   :  { %15 = vsyncpa [#allocation12], 0 }
   0x4   :  { %16 = vsyncpa [#allocation4], 0  ;;  %s1537_s24 = smov [#allocation5]   ;;  %s1538_s26 = smov [#allocation8]  }
   0x5   :  { %s35_s25 = sshll.u32 %s1537_s24, 4  ;;  %s55_s27 = sshll.u32 %s1538_s26, 4  ;;  %s36_s25 = int_to_ptr.vmem [resolvable:$true] %s35_s25  ;;  %s56_s27 = int_to_ptr.vmem [resolvable:$true] %s55_s27 }
   0x6   :  { %s1351_s30 = scalar_lea.hbm %s2002_s1, 64 }
   0x7   :  { %p1352_p0 = scmp.ne.s32.totalorder %s2002_s1, %s1351_s30  ;;  %p1355_p1 = scmp.lt.u32.totalorder %s1351_s30, %s2002_s1 }
   0x9   :  { %p1357_p2 = pnand %p1355_p1, %p1352_p0 }
   0xb   :  { %1360 = shalt.err (!%p1357_p2)
}
   0xc   :  { %s1361_s12 = scalar_lea.vmem %s36_s25, 64  ;;  %p1366_p4 = scmp.lt.s32.totalorder %s36_s25, %s36_s25 }
   0xd   :  { %p1362_p3 = scmp.ne.s32.totalorder %s36_s25, %s1361_s12  ;;  %p1367_p5 = scmp.lt.s32.totalorder %s1361_s12, %s1361_s12 }
   0xf   :  { %p1368_p6 = por %p1367_p5, %p1366_p4 }
  0x11   :  { %p1369_p7 = pnand %p1368_p6, %p1362_p3 }
  0x13   :  { %1372 = shalt.err (!%p1369_p7)
}
  0x14   :  { %38 = dma.hbm_to_vmem [thread:$0]  %s2002_s1, 64, %s36_s25, [#allocation6]  }
  0x15   :  { %s1373_s17 = scalar_lea.hbm %s2004_s3, 64 }
  0x16   :  { %p1374_p8 = scmp.ne.s32.totalorder %s2004_s3, %s1373_s17  ;;  %p1377_p9 = scmp.lt.u32.totalorder %s1373_s17, %s2004_s3 }
  0x18   :  { %p1379_p10 = pnand %p1377_p9, %p1374_p8 }
  0x1a   :  { %1382 = shalt.err (!%p1379_p10)
}
  0x1b   :  { %s1383_s22 = scalar_lea.vmem %s56_s27, 64  ;;  %p1388_p12 = scmp.lt.s32.totalorder %s56_s27, %s56_s27 }
  0x1c   :  { %p1384_p11 = scmp.ne.s32.totalorder %s56_s27, %s1383_s22  ;;  %p1389_p13 = scmp.lt.s32.totalorder %s1383_s22, %s1383_s22 }
  0x1e   :  { %p1390_p0 = por %p1389_p13, %p1388_p12 }
  0x20   :  { %p1391_p1 = pnand %p1390_p0, %p1384_p11 }
  0x22   :  { %1394 = shalt.err (!%p1391_p1)
}
  0x23   :  { %58 = dma.hbm_to_vmem [thread:$0]  %s2004_s3, 64, %s56_s27, [#allocation9]  }
  0x24   :  { %s1539_s24 = smov [#allocation11]   ;;  %s1395_s29 = scalar_lea.hbm %s2006_s5, 1024 }
  0x25   :  { %s74_s25 = sshll.u32 %s1539_s24, 4  ;;  %p1396_p2 = scmp.ne.s32.totalorder %s2006_s5, %s1395_s29  ;;  %s75_s25 = int_to_ptr.vmem [resolvable:$true] %s74_s25 }
  0x26   :  { %p1399_p3 = scmp.lt.u32.totalorder %s1395_s29, %s2006_s5 }
  0x28   :  { %p1401_p4 = pnand %p1399_p3, %p1396_p2 }
  0x2a   :  { %1404 = shalt.err (!%p1401_p4)
}
  0x2b   :  { %s1405_s11 = scalar_lea.vmem %s75_s25, 1024  ;;  %p1410_p6 = scmp.lt.s32.totalorder %s75_s25, %s75_s25 }
  0x2c   :  { %p1406_p5 = scmp.ne.s32.totalorder %s75_s25, %s1405_s11  ;;  %p1411_p7 = scmp.lt.s32.totalorder %s1405_s11, %s1405_s11 }
  0x2e   :  { %p1412_p8 = por %p1411_p7, %p1410_p6 }
  0x30   :  { %p1413_p9 = pnand %p1412_p8, %p1406_p5 }
  0x32   :  { %1416 = shalt.err (!%p1413_p9)
}
  0x33   :  { %s1540_s3 = smov 64   ;;  %s1541_s27 = smov 4  }
  0x34   :  { %80 = dma.hbm_to_vmem [thread:$0]  %s2006_s5, 1024, %s75_s25, [#allocation12], %s1540_s3, %s1540_s3, %s1541_s27  }
  0x35   :  { %s1542_s14 = smov [#allocation2]   ;;  %s1417_s18 = scalar_lea.hbm %s2001_s0, 2048 }
  0x36   :  { %s22_s15 = sshll.u32 %s1542_s14, 4  ;;  %p1418_p10 = scmp.ne.s32.totalorder %s2001_s0, %s1417_s18  ;;  %s23_s15 = int_to_ptr.vmem [resolvable:$true] %s22_s15 }
  0x37   :  { %p1421_p11 = scmp.lt.u32.totalorder %s1417_s18, %s2001_s0 }
  0x39   :  { %p1423_p12 = pnand %p1421_p11, %p1418_p10 }
  0x3b   :  { %1426 = shalt.err (!%p1423_p12)
}
  0x3c   :  { %s1427_s1 = scalar_lea.vmem %s23_s15, 2048  ;;  %p1432_p0 = scmp.lt.s32.totalorder %s23_s15, %s23_s15 }
  0x3d   :  { %p1428_p13 = scmp.ne.s32.totalorder %s23_s15, %s1427_s1  ;;  %p1433_p1 = scmp.lt.s32.totalorder %s1427_s1, %s1427_s1 }
  0x3f   :  { %p1434_p2 = por %p1433_p1, %p1432_p0 }
  0x41   :  { %p1435_p3 = pnand %p1434_p2, %p1428_p13 }
  0x43   :  { %1438 = shalt.err (!%p1435_p3)
}
  0x44   :  { %s1543_s5 = smov 128   ;;  %s1544_s23 = smov 8  }
  0x45   :  { %28 = dma.hbm_to_vmem [thread:$0]  %s2001_s0, 2048, %s23_s15, [#allocation3], %s1543_s5, %s1543_s5, %s1544_s23  }
  0x46   :  { %s1545_s26 = smov [#allocation7]   ;;  %s1546_s29 = smov [#allocation10]  }
  0x47   :  { %s45_s28 = sshll.u32 %s1545_s26, 4  ;;  %s65_s30 = sshll.u32 %s1546_s29, 4  ;;  %s46_s28 = int_to_ptr.vmem [resolvable:$true] %s45_s28  ;;  %s66_s30 = int_to_ptr.vmem [resolvable:$true] %s65_s30 }
  0x48   :  { %s1439_s10 = scalar_lea.hbm %s2003_s2, 64 }
  0x49   :  { %p1440_p4 = scmp.ne.s32.totalorder %s2003_s2, %s1439_s10  ;;  %p1443_p5 = scmp.lt.u32.totalorder %s1439_s10, %s2003_s2 }
  0x4b   :  { %p1445_p6 = pnand %p1443_p5, %p1440_p4 }
  0x4d   :  { %1448 = shalt.err (!%p1445_p6)
}
  0x4e   :  { %s1449_s0 = scalar_lea.vmem %s46_s28, 64  ;;  %p1454_p8 = scmp.lt.s32.totalorder %s46_s28, %s46_s28 }
  0x4f   :  { %p1450_p7 = scmp.ne.s32.totalorder %s46_s28, %s1449_s0  ;;  %p1455_p9 = scmp.lt.s32.totalorder %s1449_s0, %s1449_s0 }
  0x51   :  { %p1456_p10 = por %p1455_p9, %p1454_p8 }
  0x53   :  { %p1457_p11 = pnand %p1456_p10, %p1450_p7 }
  0x55   :  { %1460 = shalt.err (!%p1457_p11)
}
  0x56   :  { %48 = dma.hbm_to_vmem [thread:$0]  %s2003_s2, 64, %s46_s28, [#allocation6]  }
  0x57   :  { %s1461_s17 = scalar_lea.hbm %s2005_s4, 16 }
  0x58   :  { %p1462_p12 = scmp.ne.s32.totalorder %s2005_s4, %s1461_s17  ;;  %p1465_p13 = scmp.lt.u32.totalorder %s1461_s17, %s2005_s4 }
  0x5a   :  { %p1467_p0 = pnand %p1465_p13, %p1462_p12 }
  0x5c   :  { %1470 = shalt.err (!%p1467_p0)
}
  0x5d   :  { %s1471_s22 = scalar_lea.vmem %s66_s30, 16  ;;  %s1475_s1 = scalar_lea.vmem %s66_s30, 32 }
  0x5e   :  { %p1472_p1 = scmp.ne.s32.totalorder %s66_s30, %s1471_s22  ;;  %p1476_p2 = scmp.lt.s32.totalorder %s66_s30, %s66_s30 }
  0x5f   :  { %p1477_p3 = scmp.lt.s32.totalorder %s1475_s1, %s1471_s22 }
  0x61   :  { %p1478_p4 = por %p1477_p3, %p1476_p2 }
  0x63   :  { %p1479_p5 = pnand %p1478_p4, %p1472_p1 }
  0x65   :  { %1482 = shalt.err (!%p1479_p5)
}
  0x66   :  { %68 = dma.hbm_to_vmem [thread:$0]  %s2005_s4, 16, %s66_s30, [#allocation9]  }
  0x67   :  { %s1547_s23 = smov [#allocation13]   ;;  %s1483_s28 = scalar_lea.hbm %s2007_s6, 16 }
  0x68   :  { %s87_s24 = sshll.u32 %s1547_s23, 4  ;;  %p1484_p6 = scmp.ne.s32.totalorder %s2007_s6, %s1483_s28  ;;  %s88_s24 = int_to_ptr.vmem [resolvable:$true] %s87_s24 }
  0x69   :  { %p1487_p7 = scmp.lt.u32.totalorder %s1483_s28, %s2007_s6 }
  0x6b   :  { %p1489_p8 = pnand %p1487_p7, %p1484_p6 }
  0x6d   :  { %1492 = shalt.err (!%p1489_p8)
}
  0x6e   :  { %s1493_s11 = scalar_lea.vmem %s88_s24, 16  ;;  %s1497_s4 = scalar_lea.vmem %s88_s24, 32 }
  0x6f   :  { %p1494_p9 = scmp.ne.s32.totalorder %s88_s24, %s1493_s11  ;;  %p1498_p10 = scmp.lt.s32.totalorder %s88_s24, %s88_s24 }
  0x70   :  { %p1499_p11 = scmp.lt.s32.totalorder %s1497_s4, %s1493_s11 }
  0x72   :  { %p1500_p12 = por %p1499_p11, %p1498_p10 }
  0x74   :  { %p1501_p13 = pnand %p1500_p12, %p1494_p9 }
  0x76   :  { %1504 = shalt.err (!%p1501_p13)
}
  0x77   :  { %90 = dma.hbm_to_vmem [thread:$0]  %s2007_s6, 16, %s88_s24, [#allocation12]  }
  0x78   :  { %1527 = dma.done.wait [#allocation3], 2048  }
  0x79   :  { %1528 = vsyncadd [#allocation3], 4294965248 }
  0x7a   :  { %1529 = dma.done.wait [#allocation6], 128  }
  0x7b   :  { %1530 = vsyncadd [#allocation6], 4294967168 }
  0x7c   :  { %1531 = dma.done.wait [#allocation9], 80  }
  0x7d   :  { %1532 = vsyncadd [#allocation9], 4294967216 }
  0x7e   :  { %1533 = dma.done.wait [#allocation12], 1040  }
  0x7f   :  { %1534 = vsyncadd [#allocation12], 4294966256  ;;  %v129_v0 = vlaneseq  ;;  %vm519_vm0 = vcmask 1043456   ;;  %vm494_vm2 = vcmask 64512   ;;  %v492_v7 = vld [vmem:[#allocation5] sm:$0xf] }
  0x80   :  { %v1682_v8 = vld [vmem:[#allocation2] sm:$0xff]  ;;  %v1684_v9 = vld [vmem:[#allocation2 + $0x8] sm:$0xff]  ;;  %1327 = vmatprep.subr.msk.bf16.mxu0 %vm519_vm0, %v492_v7  ;;  %v645_v12 = vsel %vm519_vm0, %v492_v7, 0  ;;  %v1692_v13 = vld [vmem:[#allocation2 + $0x78] sm:$0xff]  ;;  %s1550_s6 = smov [#allocation14]  }
  0x81   :  { %v1675_v1 = vshrl.u32 %v129_v0, 7  ;;  %v338_v14 = vrot.slane %v1682_v8, 7  ;;  %v339_v15 = vrot.slane %v1684_v9, 7  ;;  %v1696_v16 = vld [vmem:[#allocation2 + $0x10] sm:$0xff]  ;;  %1239 = vmatpush3.bf16.msra.mxu0 %v645_v12  ;;  %v353_v18 = vrot.slane %v1692_v13, 7  ;;  %v1706_v21 = vld [vmem:[#allocation2 + $0x18] sm:$0xff] }
  0x82   :  { %v744_v20 = vld [vmem:[#allocation8] sm:$0xf]  ;;  %v468_v23 = vpack.c.bf16 %v1684_v9, %v1682_v8  ;;  %v340_v25 = vrot.slane %v1696_v16, 7  ;;  %v341_v26 = vrot.slane %v1706_v21, 7  ;;  %v1719_v28 = vld [vmem:[#allocation2 + $0x20] sm:$0xff]  ;;  %v1736_v38 = vld [vmem:[#allocation2 + $0x30] sm:$0xff] }
  0x83   :  { %v132_v2 = vadd.s32 16, %v1675_v1  ;;  %v150_v3 = vand.u32 15, %v1675_v1  ;;  %v134_v4 = vadd.s32 32, %v1675_v1  ;;  %vm354_vm1 = vcmp.lt.s32.totalorder %v1675_v1, 1  ;;  %1328 = vmatprep.subr.msk.bf16.mxu0 %vm519_vm0, %v744_v20  ;;  %v1721_v29 = vld [vmem:[#allocation2 + $0x28] sm:$0xff]  ;;  %v1738_v39 = vld [vmem:[#allocation2 + $0x38] sm:$0xff] }
  0x84   :  { %v136_v6 = vadd.s32 48, %v1675_v1  ;;  %v138_v10 = vadd.s32 64, %v1675_v1  ;;  %v1688_v11 = vadd.s32 80, %v1675_v1  ;;  %v1699_v17 = vadd.s32 96, %v1675_v1  ;;  %1222 = vmatprep.mubr.msk.bf16.mxu1 %vm494_vm2, %v468_v23  ;;  %v1744_v43 = vld [vmem:[#allocation2 + $0x40] sm:$0xff]  ;;  %v1746_v44 = vld [vmem:[#allocation2 + $0x48] sm:$0xff] }
  0x85   :  { %v164_v5 = vand.u32 15, %v132_v2  ;;  %vm1702_vm3 = vcmp.eq.s32.totalorder %v150_v3, 0  ;;  %v178_v22 = vand.u32 15, %v134_v4  ;;  %v369_v24 = vsel %vm354_vm1, %v338_v14, %v339_v15  ;;  %v493_v45 = vld [vmem:[#allocation7] sm:$0xf]  ;;  %v1759_v54 = vld [vmem:[#allocation2 + $0x50] sm:$0xff] }
  0x86   :  { %v370_v30 = vsel %vm354_vm1, %v353_v18, %v338_v14  ;;  %v342_v31 = vrot.slane %v1719_v28, 7  ;;  %v192_v32 = vand.u32 15, %v136_v6  ;;  %v206_v33 = vand.u32 15, %v138_v10  ;;  %1326 = vmatprep.subr.msk.bf16.mxu1 %vm519_vm0, %v493_v45  ;;  %v1768_v58 = vld [vmem:[#allocation2 + $0x58] sm:$0xff]  ;;  %v1776_v62 = vld [vmem:[#allocation2 + $0x60] sm:$0xff]  ;;  %s1138_s27 = sshll.u32 %s1550_s6, 4  ;;  %s1139_s27 = int_to_ptr.vmem [resolvable:$true] %s1138_s27 }
  0x87   :  { %vm1715_vm4 = vcmp.eq.s32.totalorder %v164_v5, 0  ;;  %v387_v34 = vsel %vm1702_vm3, 0.0, %v370_v30  ;;  %v367_v35 = vsel %vm354_vm1, %v340_v25, %v341_v26  ;;  %v368_v36 = vsel %vm354_vm1, %v339_v15, %v340_v25  ;;  %v1787_v5 = vld [vmem:[#allocation2 + $0x68] sm:$0xff]  ;;  %v1809_v25 = vld [vmem:[#allocation2 + $0x70] sm:$0xff]  ;;  %s1505_s12 = scalar_lea.vmem %s1139_s27, 128  ;;  %p1510_p1 = scmp.lt.s32.totalorder %s1139_s27, %s1139_s27 }
  0x88   :  { %v343_v37 = vrot.slane %v1721_v29, 7  ;;  %v476_v40 = vpack.c.bf16 %v369_v24, %v387_v34  ;;  %v389_v41 = vsel %vm1715_vm4, 0.0, %v368_v36  ;;  %v366_v42 = vsel %vm354_vm1, %v341_v26, %v342_v31  ;;  %p1506_p0 = scmp.ne.s32.totalorder %s1139_s27, %s1505_s12  ;;  %p1511_p2 = scmp.lt.s32.totalorder %s1505_s12, %s1505_s12 }
  0x89   :  { %vm375_vm5 = vcmp.eq.s32.totalorder %v178_v22, 0  ;;  %v477_v46 = vpack.c.bf16 %v367_v35, %v389_v41  ;;  %v770_v47 = vsel %vm519_vm0, %v744_v20, 0  ;;  %v344_v51 = vrot.slane %v1736_v38, 7 }
  0x8a   :  { %v365_v48 = vsel %vm354_vm1, %v342_v31, %v343_v37  ;;  %v391_v49 = vsel %vm375_vm5, 0.0, %v366_v42  ;;  %1240 = vmatprep.mubr.msk.bf16.mxu0 %vm494_vm2, %v476_v40  ;;  %v345_v52 = vrot.slane %v1738_v39, 7  ;;  %vm1755_vm6 = vcmp.eq.s32.totalorder %v192_v32, 0  ;;  %p1512_p3 = por %p1511_p2, %p1510_p1 }
  0x8b   :  { %v478_v50 = vpack.c.bf16 %v365_v48, %v391_v49  ;;  %1241 = vmatmul.mubr.msk.bf16.vlgmr.msra.gmra.mrb[0].mxu0 %vm494_vm2, %v477_v46  ;;  %v346_v55 = vrot.slane %v1744_v43, 7  ;;  %v347_v56 = vrot.slane %v1746_v44, 7  ;;  %vm1764_vm7 = vcmp.eq.s32.totalorder %v206_v33, 0 }
  0x8c   :  { %1257 = vmatpush3.bf16.msra.mxu0 %v770_v47  ;;  %v363_v59 = vsel %vm354_vm1, %v344_v51, %v345_v52  ;;  %v364_v60 = vsel %vm354_vm1, %v343_v37, %v344_v51  ;;  %v220_v61 = vand.u32 15, %v1688_v11  ;;  %v348_v3 = vrot.slane %v1759_v54, 7  ;;  %p1513_p4 = pnand %p1512_p3, %p1506_p0 }
  0x8d   :  { %1244 = vmatprep.mubr.msk.bf16.mxu0 %vm494_vm2, %v478_v50  ;;  %v393_v63 = vsel %vm1755_vm6, 0.0, %v364_v60  ;;  %v361_v0 = vsel %vm354_vm1, %v346_v55, %v347_v56  ;;  %v362_v2 = vsel %vm354_vm1, %v345_v52, %v346_v55  ;;  %v234_v7 = vand.u32 15, %v1699_v17 }
  0x8e   :  { %v395_v4 = vsel %vm1764_vm7, 0.0, %v362_v2  ;;  %v479_v6 = vpack.c.bf16 %v363_v59, %v393_v63  ;;  %v350_v10 = vrot.slane %v1776_v62, 7  ;;  %v349_v12 = vrot.slane %v1768_v58, 7 }
  0x8f   :  { %v480_v11 = vpack.c.bf16 %v361_v0, %v395_v4  ;;  %vm1792_vm8 = vcmp.eq.s32.totalorder %v220_v61, 0  ;;  %v144_v15 = vadd.s32 112, %v1675_v1  ;;  %v360_v19 = vsel %vm354_vm1, %v347_v56, %v348_v3 }
  0x90   :  { %v351_v20 = vrot.slane %v1787_v5, 7  ;;  %v521_v22 = vsel %vm519_vm0, %v493_v45, 0  ;;  %v469_v17 = vpack.c.bf16 %v1706_v21, %v1696_v16  ;;  %v358_v23 = vsel %vm354_vm1, %v349_v12, %v350_v10 }
  0x91   :  { %vm1805_vm9 = vcmp.eq.s32.totalorder %v234_v7, 0  ;;  %1221 = vmatpush3.bf16.msra.mxu1 %v521_v22  ;;  %v131_v26 = vadd.s32 8, %v1675_v1  ;;  %v359_v27 = vsel %vm354_vm1, %v348_v3, %v349_v12  ;;  %v397_v30 = vsel %vm1792_vm8, 0.0, %v360_v19 }
  0x92   :  { %v470_v31 = vpack.c.bf16 %v1721_v29, %v1719_v28  ;;  %v357_v32 = vsel %vm354_vm1, %v350_v10, %v351_v20  ;;  %v399_v33 = vsel %vm1805_vm9, 0.0, %v358_v23  ;;  %v248_v34 = vand.u32 15, %v144_v15 }
  0x93   :  { %1245 = vmatmul.mubr.msk.bf16.gmra.mrb[4].mxu0 %vm494_vm2, %v479_v6  ;;  %v352_v35 = vrot.slane %v1809_v25, 7  ;;  %v404_v36 = vrot.slane %v1684_v9, 1  ;;  %v157_v37 = vand.u32 15, %v131_v26  ;;  %v405_v40 = vrot.slane %v1696_v16, 1 }
  0x94   :  { %1248 = vmatprep.mubr.msk.bf16.mxu0 %vm494_vm2, %v480_v11  ;;  %1223 = vmatmul.mubr.msk.bf16.vlgmr.msra.gmra.mrb[0].mxu1 %vm494_vm2, %v469_v17  ;;  %v481_v41 = vpack.c.bf16 %v359_v27, %v397_v30  ;;  %vm419_vm10 = vcmp.lt.s32.totalorder %v1675_v1, 7  ;;  %v403_v42 = vrot.slane %v1682_v8, 1  ;;  %v482_v45 = vpack.c.bf16 %v357_v32, %v399_v33  ;;  %v1344_v8 = vld [vmem:[#allocation11 + $0x8] sm:$0xff]  }
  0x95   :  { %1226 = vmatprep.mubr.msk.bf16.mxu1 %vm494_vm2, %v470_v31  ;;  %v356_v46 = vsel %vm354_vm1, %v351_v20, %v352_v35  ;;  %vm1833_vm11 = vcmp.eq.s32.totalorder %v248_v34, 0  ;;  %v133_v9 = vadd.s32 24, %v1675_v1  ;;  %v471_v16 = vpack.c.bf16 %v1738_v39, %v1736_v38 }
  0x96   :  { %v433_v48 = vsel %vm419_vm10, %v404_v36, %v405_v40  ;;  %vm1842_vm12 = vcmp.eq.s32.totalorder %v157_v37, 15  ;;  %v135_v50 = vadd.s32 40, %v1675_v1  ;;  %v472_v51 = vpack.c.bf16 %v1746_v44, %v1744_v43 }
  0x97   :  { %v406_v52 = vrot.slane %v1706_v21, 1  ;;  %v355_v53 = vsel %vm354_vm1, %v352_v35, %v353_v18  ;;  %v401_v55 = vsel %vm1833_vm11, 0.0, %v356_v46  ;;  %v407_v56 = vrot.slane %v1719_v28, 1 }
  0x98   :  { %v434_v57 = vsel %vm419_vm10, %v403_v42, %v404_v36  ;;  %v453_v21 = vsel %vm1842_vm12, 0.0, %v433_v48  ;;  %v171_v59 = vand.u32 15, %v133_v9  ;;  %v185_v60 = vand.u32 15, %v135_v50 }
  0x99   :  { %v408_v61 = vrot.slane %v1721_v29, 1  ;;  %v409_v18 = vrot.slane %v1736_v38, 1  ;;  %v483_v63 = vpack.c.bf16 %v355_v53, %v401_v55  ;;  %v484_v28 = vpack.c.bf16 %v453_v21, %v434_v57  ;;  %v1343_v21 = vld [vmem:[#allocation11] sm:$0xff]  }
  0x9a   :  { %v431_v0 = vsel %vm419_vm10, %v406_v52, %v407_v56  ;;  %vm1871_vm13 = vcmp.eq.s32.totalorder %v171_v59, 15  ;;  %v137_v3 = vadd.s32 56, %v1675_v1  ;;  %v473_v4 = vpack.c.bf16 %v1768_v58, %v1759_v54 }
  0x9b   :  { %1249 = vmatmul.mubr.msk.bf16.gmra.mrb[8].mxu0 %vm494_vm2, %v481_v41  ;;  %v429_v29 = vsel %vm419_vm10, %v408_v61, %v409_v18  ;;  %vm1880_vm14 = vcmp.eq.s32.totalorder %v185_v60, 15  ;;  %v139_v6 = vadd.s32 72, %v1675_v1  ;;  %v474_v7 = vpack.c.bf16 %v1787_v5, %v1776_v62  ;;  %v1346_v60 = vld [vmem:[#allocation11 + $0x18] sm:$0xff]  }
  0x9c   :  { %1252 = vmatprep.mubr.msk.bf16.mxu0 %vm494_vm2, %v482_v45  ;;  %1227 = vmatmul.mubr.msk.bf16.gmra.mrb[4].mxu1 %vm494_vm2, %v471_v16  ;;  %v432_v10 = vsel %vm419_vm10, %v405_v40, %v406_v52  ;;  %v455_v11 = vsel %vm1871_vm13, 0.0, %v431_v0  ;;  %v410_v12 = vrot.slane %v1738_v39, 1  ;;  %v430_v14 = vsel %vm419_vm10, %v407_v56, %v408_v61  ;;  %v1348_v61 = vld [vmem:[#allocation11 + $0x28] sm:$0xff]  }
  0x9d   :  { %1230 = vmatprep.mubr.msk.bf16.mxu1 %vm494_vm2, %v472_v51  ;;  %v457_v15 = vsel %vm1880_vm14, 0.0, %v429_v29  ;;  %v199_v19 = vand.u32 15, %v137_v3  ;;  %v411_v20 = vrot.slane %v1744_v43, 1  ;;  %v213_v22 = vand.u32 15, %v139_v6 }
  0x9e   :  { %v412_v17 = vrot.slane %v1746_v44, 1  ;;  %v413_v23 = vrot.slane %v1759_v54, 1  ;;  %v485_v24 = vpack.c.bf16 %v455_v11, %v432_v10  ;;  %v486_v39 = vpack.c.bf16 %v457_v15, %v430_v14  ;;  %v1957_v15 = vld [vmem:[#allocation10] ss:$0 sm:$0xff] }
  0x9f   :  { %v427_v26 = vsel %vm419_vm10, %v410_v12, %v411_v20  ;;  %vm1905_vm15 = vcmp.eq.s32.totalorder %v199_v19, 15  ;;  %v141_v43 = vadd.s32 88, %v1675_v1  ;;  %v475_v30 = vpack.c.bf16 %v1692_v13, %v1809_v25 }
  0xa0   :  { %v425_v44 = vsel %vm419_vm10, %v412_v17, %v413_v23  ;;  %vm1914_vm0 = vcmp.eq.s32.totalorder %v213_v22, 15  ;;  %v143_v31 = vadd.s32 104, %v1675_v1  ;;  %v428_v32 = vsel %vm419_vm10, %v409_v18, %v410_v12  ;;  %v1349_v18 = vld [vmem:[#allocation11 + $0x30] sm:$0xff]  }
  0xa1   :  { %v459_v33 = vsel %vm1905_vm15, 0.0, %v427_v26  ;;  %v414_v34 = vrot.slane %v1768_v58, 1  ;;  %v426_v35 = vsel %vm419_vm10, %v411_v20, %v412_v17  ;;  %v461_v36 = vsel %vm1914_vm0, 0.0, %v425_v44 }
  0xa2   :  { %v227_v37 = vand.u32 15, %v141_v43  ;;  %v415_v40 = vrot.slane %v1776_v62, 1  ;;  %v241_v41 = vand.u32 15, %v143_v31  ;;  %v416_v45 = vrot.slane %v1787_v5, 1 }
  0xa3   :  { %1253 = vmatmul.mubr.msk.bf16.gmra.mrb[12].mxu0 %vm494_vm2, %v483_v63  ;;  %v417_v46 = vrot.slane %v1809_v25, 1  ;;  %v487_v47 = vpack.c.bf16 %v459_v33, %v428_v32  ;;  %v488_v9 = vpack.c.bf16 %v461_v36, %v426_v35  ;;  %v145_v16 = vadd.s32 120, %v1675_v1  ;;  %v1347_v1 = vld [vmem:[#allocation11 + $0x20] sm:$0xff]   ;;  %v1350_v63 = vld [vmem:[#allocation11 + $0x38] sm:$0xff]  }
  0xa4   :  { %1258 = vmatprep.mubr.msk.bf16.mxu0 %vm494_vm2, %v484_v28  ;;  %1231 = vmatmul.mubr.msk.bf16.gmra.mrb[8].mxu1 %vm494_vm2, %v473_v4  ;;  %v423_v58 = vsel %vm419_vm10, %v414_v34, %v415_v40  ;;  %vm447_vm1 = vcmp.eq.s32.totalorder %v227_v37, 15  ;;  %vm449_vm3 = vcmp.eq.s32.totalorder %v241_v41, 15  ;;  %v424_v62 = vsel %vm419_vm10, %v413_v23, %v414_v34 }
  0xa5   :  { %1234 = vmatprep.mubr.msk.bf16.mxu1 %vm494_vm2, %v474_v7  ;;  %v421_v48 = vsel %vm419_vm10, %v416_v45, %v417_v46  ;;  %v463_v5 = vsel %vm447_vm1, 0.0, %v423_v58  ;;  %v418_v25 = vrot.slane %v1692_v13, 1  ;;  %v422_v49 = vsel %vm419_vm10, %v415_v40, %v416_v45 }
  0xa6   :  { %v465_v50 = vsel %vm449_vm3, 0.0, %v421_v48  ;;  %v255_v51 = vand.u32 15, %v145_v16  ;;  %v489_v52 = vpack.c.bf16 %v463_v5, %v424_v62  ;;  %v1548_v59 = vmov 0.0  }
  0xa7   :  { %v490_v53 = vpack.c.bf16 %v465_v50, %v422_v49  ;;  %v435_v55 = vsel %vm419_vm10, %v418_v25, %v403_v42  ;;  %v420_v13 = vsel %vm419_vm10, %v417_v46, %v418_v25  ;;  %1274 = vmatprep.subr.bf16.mxu1 %v1548_v59  ;;  %v1345_v42 = vld [vmem:[#allocation11 + $0x10] sm:$0xff]   ;;  %vm1027_vm5 = vcmask 1041409  }
  0xa8   :  { %vm451_vm4 = vcmp.eq.s32.totalorder %v255_v51, 15  ;;  %1275 = vmatpush3.bf16.msra.mxu1 %v1343_v21  ;;  %vm1029_vm6 = vcmask 1042434   ;;  %vm1031_vm7 = vcmask 1043459   ;;  %vm1033_vm8 = vcmask 1044484  }
  0xa9   :  { %v467_v56 = vsel %vm451_vm4, 0.0, %v435_v55  ;;  %1276 = vmatprep.subr.bf16.mxu1 %v1548_v59  ;;  %vm1035_vm9 = vcmask 1045509   ;;  %vm1037_vm10 = vcmask 1046534   ;;  %vm1039_vm11 = vcmask 1047559  }
  0xaa   :  { %v491_v57 = vpack.c.bf16 %v467_v56, %v420_v13 }
  0xab   :  { %1259 = vmatmul.mubr.msk.bf16.vlgmr.msra.gmra.mrb[0].mxu0 %vm494_vm2, %v485_v24 }
  0xac   :  { %1262 = vmatprep.mubr.msk.bf16.mxu0 %vm494_vm2, %v486_v39  ;;  %1235 = vmatmul.mubr.msk.bf16.gmra.mrb[12].mxu1 %vm494_vm2, %v475_v30 }
  0xad   :  { %1277 = vmatpush3.bf16.msra.mxu1 %v1344_v8 }
  0xae   :  { %1278 = vmatprep.subr.bf16.mxu1 %v1548_v59 }
  0xb1   :  { %1279 = vmatpush3.bf16.msra.mxu1 %v1345_v42 }
  0xb2   :  { %1280 = vmatprep.subr.bf16.mxu1 %v1548_v59 }
  0xb3   :  { %1263 = vmatmul.mubr.msk.bf16.gmra.mrb[4].mxu0 %vm494_vm2, %v487_v47 }
  0xb4   :  { %1266 = vmatprep.mubr.msk.bf16.mxu0 %vm494_vm2, %v488_v9 }
  0xb5   :  { %1281 = vmatpush3.bf16.msra.mxu1 %v1346_v60 }
  0xb6   :  { %1282 = vmatprep.subr.bf16.mxu1 %v1548_v59 }
  0xb9   :  { %1283 = vmatpush3.bf16.msra.mxu1 %v1347_v1 }
  0xba   :  { %1284 = vmatprep.subr.bf16.mxu1 %v1548_v59 }
  0xbb   :  { %1267 = vmatmul.mubr.msk.bf16.gmra.mrb[8].mxu0 %vm494_vm2, %v489_v52 }
  0xbc   :  { %1270 = vmatprep.mubr.msk.bf16.mxu0 %vm494_vm2, %v490_v53 }
  0xbd   :  { %1285 = vmatpush3.bf16.msra.mxu1 %v1348_v61 }
  0xbe   :  { %1286 = vmatprep.subr.bf16.mxu1 %v1548_v59 }
  0xc1   :  { %1287 = vmatpush3.bf16.msra.mxu1 %v1349_v18 }
  0xc2   :  { %1288 = vmatprep.subr.bf16.mxu1 %v1548_v59 }
  0xc3   :  { %1271 = vmatmul.mubr.msk.bf16.gmra.mrb[12].mxu0 %vm494_vm2, %v491_v57  ;;  %vm1549_vm2 = vmmov 0  }
  0xc4   :  { %1290 = vmatprep.mubr.msk.bf16.mxu1 %vm1549_vm2, %v1548_v59 }
  0xc5   :  { %1289 = vmatpush3.bf16.msra.mxu1 %v1350_v63 }
 0x167   :  { %v1224_v28 = vpop.f32.mrb[0].mxu1 }
 0x168   :  { %v557_v0 = vpop.f32.mrb[1].mxu1 }
 0x169   :  { %v1225_v2 = vpop.f32.mrb[2].mxu1 }
 0x16a   :  { %v560_v3 = vpop.f32.mrb[3].mxu1 }
 0x16f   :  { %v1228_v4 = vpop.f32.mrb[4].mxu1 }
 0x170   :  { %v573_v29 = vpop.f32.mrb[5].mxu1 }
 0x171   :  { %v1229_v38 = vpop.f32.mrb[6].mxu1 }
 0x172   :  { %v576_v6 = vpop.f32.mrb[7].mxu1 }
 0x177   :  { %v1232_v7 = vpop.f32.mrb[8].mxu1 }
 0x178   :  { %v589_v10 = vpop.f32.mrb[9].mxu1 }
 0x179   :  { %v1233_v11 = vpop.f32.mrb[10].mxu1 }
 0x17a   :  { %v1955_v12 = vpop.f32.mrb[11].mxu1 }
 0x17e   :  { %v1260_v14 = vpop.f32.mrb[0].mxu0 }
 0x17f   :  { %v1294_v19 = vadd.f32 %v1260_v14, %v1224_v28  ;;  %v806_v20 = vpop.f32.mrb[1].mxu0  ;;  %v1959_v23 = vpop.f32.mrb[12].mxu1 }
 0x180   :  { %v1295_v22 = vadd.f32 %v806_v20, %v557_v0  ;;  %v1261_v17 = vpop.f32.mrb[2].mxu0  ;;  %v1962_v27 = vpop.f32.mrb[13].mxu1 }
 0x181   :  { %v894_v24 = vadd.f32 %v1294_v19, %v1957_v15  ;;  %v1296_v39 = vadd.f32 %v1261_v17, %v1225_v2  ;;  %v809_v26 = vpop.f32.mrb[3].mxu0  ;;  %v1965_v44 = vpop.f32.mrb[14].mxu1 }
 0x182   :  { %v892_v43 = vadd.f32 %v1295_v22, %v1957_v15  ;;  %v1297_v30 = vadd.f32 %v809_v26, %v560_v3  ;;  %v1968_v31 = vpop.f32.mrb[15].mxu1 }
 0x183   :  { %v895_v54 = vadd.f32 %v1296_v39, %v1957_v15  ;;  %v910_v33 = vmax.f32 %v894_v24, 0.0 }
 0x184   :  { %v893_v32 = vadd.f32 %v1297_v30, %v1957_v15  ;;  %v908_v35 = vmax.f32 %v892_v43, 0.0 }
 0x185   :  { %v911_v34 = vmax.f32 %v895_v54, 0.0 }
 0x186   :  { %v909_v36 = vmax.f32 %v893_v32, 0.0  ;;  %v1264_v37 = vpop.f32.mrb[4].mxu0 }
 0x187   :  { %v931_v40 = vadd.f32 %v911_v34, %v910_v33  ;;  %v1298_v41 = vadd.f32 %v1264_v37, %v1228_v4  ;;  %v822_v45 = vpop.f32.mrb[5].mxu0 }
 0x188   :  { %v924_v46 = vadd.f32 %v909_v36, %v908_v35  ;;  %v1299_v47 = vadd.f32 %v822_v45, %v573_v29  ;;  %v1265_v9 = vpop.f32.mrb[6].mxu0 }
 0x189   :  { %v932_v58 = vrot.slane %v931_v40, 4  ;;  %v898_v16 = vadd.f32 %v1298_v41, %v1957_v15  ;;  %v1300_v48 = vadd.f32 %v1265_v9, %v1229_v38  ;;  %v825_v62 = vpop.f32.mrb[7].mxu0 }
 0x18a   :  { %v925_v5 = vrot.slane %v924_v46, 4  ;;  %v896_v25 = vadd.f32 %v1299_v47, %v1957_v15  ;;  %v1301_v49 = vadd.f32 %v825_v62, %v576_v6 }
 0x18b   :  { %v933_v50 = vadd.f32 %v932_v58, %v931_v40  ;;  %v899_v51 = vadd.f32 %v1300_v48, %v1957_v15  ;;  %v914_v13 = vmax.f32 %v898_v16, 0.0 }
 0x18c   :  { %v926_v52 = vadd.f32 %v925_v5, %v924_v46  ;;  %v897_v53 = vadd.f32 %v1301_v49, %v1957_v15  ;;  %v912_v21 = vmax.f32 %v896_v25, 0.0 }
 0x18d   :  { %v934_v55 = vrot.slane %v933_v50, 2  ;;  %v915_v56 = vmax.f32 %v899_v51, 0.0 }
 0x18e   :  { %v927_v57 = vrot.slane %v926_v52, 2  ;;  %v913_v59 = vmax.f32 %v897_v53, 0.0  ;;  %v1268_v8 = vpop.f32.mrb[8].mxu0 }
 0x18f   :  { %v935_v42 = vadd.f32 %v934_v55, %v933_v50  ;;  %v945_v60 = vadd.f32 %v915_v56, %v914_v13  ;;  %v1302_v1 = vadd.f32 %v1268_v8, %v1232_v7  ;;  %v838_v61 = vpop.f32.mrb[9].mxu0 }
 0x190   :  { %v928_v18 = vadd.f32 %v927_v57, %v926_v52  ;;  %v938_v63 = vadd.f32 %v913_v59, %v912_v21  ;;  %v1303_v28 = vadd.f32 %v838_v61, %v589_v10  ;;  %v1269_v0 = vpop.f32.mrb[10].mxu0 }
 0x191   :  { %v936_v2 = vrot.slane %v935_v42, 1  ;;  %v946_v3 = vrot.slane %v945_v60, 4  ;;  %v902_v4 = vadd.f32 %v1302_v1, %v1957_v15  ;;  %v1304_v29 = vadd.f32 %v1269_v0, %v1233_v11  ;;  %v841_v38 = vpop.f32.mrb[11].mxu0 }
 0x192   :  { %v929_v6 = vrot.slane %v928_v18, 1  ;;  %v939_v14 = vrot.slane %v938_v63, 4  ;;  %v900_v19 = vadd.f32 %v1303_v28, %v1957_v15  ;;  %v1305_v20 = vadd.f32 %v841_v38, %v1955_v12 }
 0x193   :  { %v937_v22 = vadd.f32 %v936_v2, %v935_v42  ;;  %v947_v17 = vadd.f32 %v946_v3, %v945_v60  ;;  %v903_v7 = vadd.f32 %v1304_v29, %v1957_v15  ;;  %v918_v30 = vmax.f32 %v902_v4, 0.0 }
 0x194   :  { %v930_v24 = vadd.f32 %v929_v6, %v928_v18  ;;  %v940_v10 = vadd.f32 %v939_v14, %v938_v63  ;;  %v901_v39 = vadd.f32 %v1305_v20, %v1957_v15  ;;  %v916_v33 = vmax.f32 %v900_v19, 0.0 }
 0x195   :  { %v981_v26 = vpack.c.bf16 %v937_v22, %v937_v22  ;;  %v948_v43 = vrot.slane %v947_v17, 2  ;;  %v919_v11 = vmax.f32 %v903_v7, 0.0 }
 0x196   :  { %v980_v54 = vpack.c.bf16 %v930_v24, %v930_v24  ;;  %v941_v32 = vrot.slane %v940_v10, 2  ;;  %v917_v34 = vmax.f32 %v901_v39, 0.0  ;;  %v1272_v35 = vpop.f32.mrb[12].mxu0 }
 0x197   :  { %v1020_v36 = vunpack.c.l.b16 %v981_v26  ;;  %v949_v12 = vadd.f32 %v948_v43, %v947_v17  ;;  %v959_v37 = vadd.f32 %v919_v11, %v918_v30  ;;  %v1306_v40 = vadd.f32 %v1272_v35, %v1959_v23  ;;  %v854_v41 = vpop.f32.mrb[13].mxu0 }
 0x198   :  { %v1019_v45 = vunpack.c.l.b16 %v980_v54  ;;  %v942_v46 = vadd.f32 %v941_v32, %v940_v10  ;;  %v952_v47 = vadd.f32 %v917_v34, %v916_v33  ;;  %v1307_v9 = vadd.f32 %v854_v41, %v1962_v27  ;;  %v1273_v58 = vpop.f32.mrb[14].mxu0 }
 0x199   :  { %v950_v16 = vrot.slane %v949_v12, 1  ;;  %v960_v48 = vrot.slane %v959_v37, 4  ;;  %v906_v62 = vadd.f32 %v1306_v40, %v1957_v15  ;;  %v1308_v5 = vadd.f32 %v1273_v58, %v1965_v44  ;;  %v857_v25 = vpop.f32.mrb[15].mxu0 }
 0x19a   :  { %v1028_v49 = vsel %vm1027_vm5, %v1020_v36, %v1019_v45  ;;  %v943_v50 = vrot.slane %v942_v46, 1  ;;  %v953_v51 = vrot.slane %v952_v47, 4  ;;  %v904_v27 = vadd.f32 %v1307_v9, %v1957_v15 }
 0x19b   :  { %v951_v52 = vadd.f32 %v950_v16, %v949_v12  ;;  %v961_v23 = vadd.f32 %v960_v48, %v959_v37  ;;  %v907_v53 = vadd.f32 %v1308_v5, %v1957_v15  ;;  %v1309_v56 = vadd.f32 %v857_v25, %v1968_v31 }
 0x19c   :  { %v944_v55 = vadd.f32 %v943_v50, %v942_v46  ;;  %v954_v13 = vadd.f32 %v953_v51, %v952_v47  ;;  %v922_v59 = vmax.f32 %v906_v62, 0.0  ;;  %v920_v28 = vmax.f32 %v904_v27, 0.0  ;;  %v1175_v47 = vld [vmem:[#allocation13] ss:$0 sm:$0xff] }
 0x19d   :  { %v983_v57 = vpack.c.bf16 %v951_v52, %v951_v52  ;;  %v962_v21 = vrot.slane %v961_v23, 2  ;;  %v923_v8 = vmax.f32 %v907_v53, 0.0  ;;  %v905_v60 = vadd.f32 %v1309_v56, %v1957_v15 }
 0x19e   :  { %v982_v44 = vpack.c.bf16 %v944_v55, %v944_v55  ;;  %v955_v42 = vrot.slane %v954_v13, 2 }
 0x19f   :  { %v963_v1 = vadd.f32 %v962_v21, %v961_v23  ;;  %v973_v61 = vadd.f32 %v923_v8, %v922_v59  ;;  %v921_v0 = vmax.f32 %v905_v60, 0.0  ;;  %v1022_v2 = vunpack.c.l.b16 %v983_v57 }
 0x1a0   :  { %v1021_v18 = vunpack.c.l.b16 %v982_v44  ;;  %v956_v63 = vadd.f32 %v955_v42, %v954_v13 }
 0x1a1   :  { %v964_v3 = vrot.slane %v963_v1, 1  ;;  %v974_v4 = vrot.slane %v973_v61, 4  ;;  %v966_v38 = vadd.f32 %v921_v0, %v920_v28 }
 0x1a2   :  { %v1030_v31 = vsel %vm1029_vm6, %v1021_v18, %v1028_v49  ;;  %v957_v29 = vrot.slane %v956_v63, 1 }
 0x1a3   :  { %v965_v6 = vadd.f32 %v964_v3, %v963_v1  ;;  %v1032_v14 = vsel %vm1031_vm7, %v1022_v2, %v1030_v31  ;;  %v975_v19 = vadd.f32 %v974_v4, %v973_v61  ;;  %v967_v22 = vrot.slane %v966_v38, 4 }
 0x1a4   :  { %v958_v20 = vadd.f32 %v957_v29, %v956_v63 }
 0x1a5   :  { %v985_v15 = vpack.c.bf16 %v965_v6, %v965_v6  ;;  %v976_v17 = vrot.slane %v975_v19, 2  ;;  %v968_v24 = vadd.f32 %v967_v22, %v966_v38 }
 0x1a6   :  { %v984_v7 = vpack.c.bf16 %v958_v20, %v958_v20 }
 0x1a7   :  { %v977_v10 = vadd.f32 %v976_v17, %v975_v19  ;;  %v969_v26 = vrot.slane %v968_v24, 2  ;;  %v1024_v43 = vunpack.c.l.b16 %v985_v15 }
 0x1a8   :  { %v1023_v39 = vunpack.c.l.b16 %v984_v7 }
 0x1a9   :  { %v978_v30 = vrot.slane %v977_v10, 1  ;;  %v970_v54 = vadd.f32 %v969_v26, %v968_v24 }
 0x1aa   :  { %v1034_v11 = vsel %vm1033_vm8, %v1023_v39, %v1032_v14 }
 0x1ab   :  { %v979_v32 = vadd.f32 %v978_v30, %v977_v10  ;;  %v1036_v33 = vsel %vm1035_vm9, %v1024_v43, %v1034_v11  ;;  %v971_v34 = vrot.slane %v970_v54, 1 }
 0x1ad   :  { %v972_v35 = vadd.f32 %v971_v34, %v970_v54  ;;  %v987_v36 = vpack.c.bf16 %v979_v32, %v979_v32 }
 0x1af   :  { %v986_v12 = vpack.c.bf16 %v972_v35, %v972_v35  ;;  %v1026_v40 = vunpack.c.l.b16 %v987_v36 }
 0x1b1   :  { %v1025_v37 = vunpack.c.l.b16 %v986_v12 }
 0x1b3   :  { %v1038_v41 = vsel %vm1037_vm10, %v1025_v37, %v1036_v33 }
 0x1b4   :  { %v1040_v45 = vsel %vm1039_vm11, %v1026_v40, %v1038_v41 }
 0x1b5   :  { %v1041_v46 = vpack.c.b16 %v1040_v45, %v1040_v45 }
 0x1b7   :  { %1291 = vmatmul.mubr.bf16.vlgmr.msra.gmra.mrb[16].mxu1 %v1041_v46 }
 0x28a   :  { %v1125_v9 = vpop.f32.mrb[16].mxu1 }
 0x28b   :  { %v1126_v58 = vadd.f32 %v1175_v47, %v1125_v9  ;;  %v1292_v16 = vpop.f32.mrb[17].mxu1 }
 0x28c   :  { %v1128_v48 = vpop.f32.mrb[18].mxu1 }
 0x28d   :  { %1131 = vst [vmem:[#allocation14] sm:$0xff] %v1126_v58  ;;  %v1293_v62 = vpop.f32.mrb[19].mxu1 }
 0x28e   :  { %1516 = shalt.err (!%p1513_p4)
}
 0x28f   :  { %s1517_s14 = scalar_lea.hbm %s2008_s7, 128 }
 0x290   :  { %p1518_p5 = scmp.ne.s32.totalorder %s2008_s7, %s1517_s14  ;;  %p1521_p6 = scmp.lt.u32.totalorder %s1517_s14, %s2008_s7 }
 0x292   :  { %p1523_p7 = pnand %p1521_p6, %p1518_p5 }
 0x294   :  { %1526 = shalt.err (!%p1523_p7)
}
 0x295   :  { %1141 = dma.vmem_to_hbm [thread:$0]  %s1139_s27, 128, %s2008_s7, [#allocation4]  }
 0x296   :  { %1535 = dma.done.wait [#allocation4], 128  }
 0x297   :  { %1536 = vsyncadd [#allocation4], 4294967168 }
 0x298   :  { %1145 = vsyncpa [#allocation3], 1 }
 0x299   :  { %1146 = vsyncpa [#allocation6], 1 }
 0x29a   :  { %1147 = vsyncpa [#allocation9], 1 }
 0x29b   :  { %1148 = vsyncpa [#allocation12], 1 }
 0x29c   :  { %1149 = vsyncpa [#allocation4], 1 }

</bundles_post_ra>
